<compile_context>
chip_gen: v6e
topology: v6e:2x2x1
jax: 0.10.0
libtpu: 0.0.40
codegen_flags: <defaults>
</compile_context>

<pallas_src>
import functools

import jax
import jax.numpy as jnp
from jax import lax
from jax.experimental import pallas as pl
from jax.experimental.pallas import tpu as pltpu

MAX_DEC_LENGTH = 100
MAX_TYPE_NUM = 5


def _layer_norm(x, gamma, beta, eps):
    mu = jnp.mean(x, axis=-1, keepdims=True)
    var = jnp.mean(jnp.square(x - mu), axis=-1, keepdims=True)
    return (x - mu) * lax.rsqrt(var + eps) * gamma + beta


def _prev_pred_kernel(inds_ref,                     # (B, S) int32, SMEM (scalar prefetch)
                      ans_ref,                      # (ans_num, H) VMEM, grid-constant
                      ocr_ref,                      # (ocr_num, H) VMEM, this batch item
                      m_ref,                        # (S, 1) f32, 1.0 where index is an OCR token
                      emb0_ref, emb1_ref,           # (S, H) precomputed LN(pos + type{0,1})
                      ans_g, ans_b, ocr_g, ocr_b,   # (1, H) LayerNorm params
                      out_ref,                      # (S, H) output block
                      rows_ref,                     # (S, H) f32 scratch
                      *, eps, ans_num, ocr_num):
    b = pl.program_id(0)
    S, H = out_ref.shape

    # ---- index gather: one row per decode position, ans vs ocr table chosen by index ----
    # Indices are clamped (like jnp.take_along_axis); the PyTorch module assumes in-range
    # indices anyway, so out-of-range values just pick the nearest valid row.
    def gather_one(s):
        idx = inds_ref[b, s]
        in_ocr = idx >= ans_num
        a_idx = jnp.clip(idx, 0, ans_num - 1)
        o_idx = jnp.clip(idx - ans_num, 0, ocr_num - 1)
        ans_row = ans_ref[pl.ds(a_idx, 1), :]                 # (1, H)
        ocr_row = ocr_ref[pl.ds(o_idx, 1), :]                 # (1, H)
        rows_ref[pl.ds(s, 1), :] = jnp.where(in_ocr, ocr_row, ans_row)

    if S <= 32:                      # short decode lengths: fully unroll at trace time
        for s in range(S):
            gather_one(s)
    else:
        def body(s, carry):
            gather_one(s)
            return carry
        lax.fori_loop(0, S, body, 0)

    # ---- vectorized LayerNorm over just the S gathered rows (per-row ans/ocr params) ----
    rows = rows_ref[...]                                      # (S, H)
    m = m_ref[...]                                            # (S, 1), 1.0 for OCR rows
    gamma = ans_g[...] + m * (ocr_g[...] - ans_g[...])        # (S, H)
    beta = ans_b[...] + m * (ocr_b[...] - ans_b[...])         # (S, H)
    raw_ln = _layer_norm(rows, gamma, beta, eps)

    # ---- position + token-type embedding (already LayerNormed in the wrapper), per-row select ----
    # Token type id is (prev_ind >= ans_num) in {0,1}, exactly as in mmf's PrevPredEmbeddings;
    # type_table rows 2..4 are intentionally unused.
    # TODO(synk): emb_dropout is identity here (inference / eval mode).
    emb = emb0_ref[...] + m * (emb1_ref[...] - emb0_ref[...])
    out_ref[...] = (raw_ln + emb).astype(out_ref.dtype)


def prev_pred_embeddings(params, ans_emb, ocr_emb, prev_inds, *, eps=1e-12):
    """JAX/Pallas equivalent of PrevPredEmbeddings.forward (eval mode)."""
    B, S = prev_inds.shape
    ans_num, H = ans_emb.shape
    ocr_num = ocr_emb.shape[1]

    prev_inds = prev_inds.astype(jnp.int32)

    # Batch-invariant hoists (O(S*H) glue, computed once per call):
    #   only two distinct LN(pos + type) row sets exist since type id is in {0,1}.
    pos = params["pos_table"][:S, :]                          # (S, H)
    type01 = params["type_table"][:2, :]                      # (2, H)
    emb01 = _layer_norm(pos[None, :, :] + type01[:, None, :],
                        params["emb_g"], params["emb_b"], eps)  # (2, S, H)
    emb0, emb1 = emb01[0], emb01[1]
    is_ocr = (prev_inds >= ans_num).astype(jnp.float32)[:, :, None]   # (B, S, 1)

    def vec(p):  # LN params as (1, H) for clean broadcasting in-kernel
        return p.reshape(1, H)

    kernel = functools.partial(_prev_pred_kernel, eps=eps,
                               ans_num=ans_num, ocr_num=ocr_num)

    fixed2 = lambda b, inds: (0, 0)
    # TODO(synk): at real m4c sizes (ans_num~5k, H=768) move ans_emb to memory_space=pl.ANY
    # and DMA-gather only the selected rows so it never occupies VMEM on v5e/v7x.
    grid_spec = pltpu.PrefetchScalarGridSpec(
        num_scalar_prefetch=1,
        grid=(B,),
        in_specs=[
            pl.BlockSpec((ans_num, H), fixed2),                           # ans_emb (grid-constant)
            pl.BlockSpec((None, ocr_num, H), lambda b, inds: (b, 0, 0)),  # ocr_emb
            pl.BlockSpec((None, S, 1), lambda b, inds: (b, 0, 0)),        # is_ocr mask
            pl.BlockSpec((S, H), fixed2),                                 # emb0 = LN(pos + type0)
            pl.BlockSpec((S, H), fixed2),                                 # emb1 = LN(pos + type1)
            pl.BlockSpec((1, H), fixed2),                                 # ans LN gamma
            pl.BlockSpec((1, H), fixed2),                                 # ans LN beta
            pl.BlockSpec((1, H), fixed2),                                 # ocr LN gamma
            pl.BlockSpec((1, H), fixed2),                                 # ocr LN beta
        ],
        out_specs=pl.BlockSpec((None, S, H), lambda b, inds: (b, 0, 0)),
        scratch_shapes=[pltpu.VMEM((S, H), jnp.float32)],
    )

    cost = pl.CostEstimate(
        flops=int(12 * B * S * H),
        transcendentals=int(B * S),
        bytes_accessed=int(4 * (ans_num * H + B * ocr_num * H + 2 * S * H + 2 * B * S * H)),
    )

    return pl.pallas_call(
        kernel,
        out_shape=jax.ShapeDtypeStruct((B, S, H), jnp.float32),
        grid_spec=grid_spec,
        compiler_params=pltpu.CompilerParams(
            dimension_semantics=("parallel",),
            vmem_limit_bytes=32 * 1024 * 1024,
        ),
        cost_estimate=cost,
    )(prev_inds, ans_emb, ocr_emb, is_ocr, emb0, emb1,
      vec(params["ans_g"]), vec(params["ans_b"]),
      vec(params["ocr_g"]), vec(params["ocr_b"]))


def _reference(params, ans_emb, ocr_emb, prev_inds, eps=1e-12):
    """Pure-JAX reference mirroring the PyTorch forward."""
    B, S = prev_inds.shape
    ans_num, H = ans_emb.shape

    def ln(x, g, b):
        mu = jnp.mean(x, -1, keepdims=True)
        var = jnp.mean(jnp.square(x - mu), -1, keepdims=True)
        return (x - mu) * lax.rsqrt(var + eps) * g + b

    ans_ln = ln(ans_emb, params["ans_g"], params["ans_b"])
    ocr_ln = ln(ocr_emb, params["ocr_g"], params["ocr_b"])
    cat = jnp.concatenate([jnp.broadcast_to(ans_ln[None], (B, ans_num, H)), ocr_ln], axis=1)
    raw = jnp.take_along_axis(cat, prev_inds[..., None], axis=1)          # (B, S, H)
    pos = jnp.broadcast_to(params["pos_table"][:S][None], (B, S, H))
    tok = params["type_table"][(prev_inds >= ans_num).astype(jnp.int32)]  # (B, S, H)
    emb = ln(pos + tok, params["emb_g"], params["emb_b"])
    return raw + emb


if __name__ == "__main__":
    B, S, H = 2, 8, 32
    ans_num, ocr_num = 16, 12
    eps = 1e-12

    key = jax.random.PRNGKey(0)
    ks = jax.random.split(key, 12)

    params = {
        "pos_table": jax.random.normal(ks[0], (MAX_DEC_LENGTH, H), jnp.float32) * 0.02,
        "type_table": jax.random.normal(ks[1], (MAX_TYPE_NUM, H), jnp.float32) * 0.02,
        "ans_g": 1.0 + 0.1 * jax.random.normal(ks[2], (H,), jnp.float32),
        "ans_b": 0.1 * jax.random.normal(ks[3], (H,), jnp.float32),
        "ocr_g": 1.0 + 0.1 * jax.random.normal(ks[4], (H,), jnp.float32),
        "ocr_b": 0.1 * jax.random.normal(ks[5], (H,), jnp.float32),
        "emb_g": 1.0 + 0.1 * jax.random.normal(ks[6], (H,), jnp.float32),
        "emb_b": 0.1 * jax.random.normal(ks[7], (H,), jnp.float32),
    }

    ans_emb = jax.random.normal(ks[8], (ans_num, H), jnp.float32)
    ocr_emb = jax.random.normal(ks[9], (B, ocr_num, H), jnp.float32)
    prev_inds = jax.random.randint(ks[10], (B, S), 0, ans_num + ocr_num, jnp.int32)

    out = prev_pred_embeddings(params, ans_emb, ocr_emb, prev_inds, eps=eps)
    out = jax.block_until_ready(out)

    ref = _reference(params, ans_emb, ocr_emb, prev_inds, eps=eps)
    assert out.shape == (B, S, H)
    assert jnp.allclose(out, ref, atol=1e-5, rtol=1e-5), "mismatch vs reference"

    print("KERNEL_OK")
</pallas_src>

<mosaic_0001>
module attributes {stable_mosaic.version = 11 : i64} {
  func.func @_prev_pred_kernel(%arg0: i32, %arg1: memref<2x8xi32, #tpu.memory_space<smem>>, %arg2: memref<16x32xf32, #tpu.memory_space<vmem>>, %arg3: memref<1x12x32xf32, #tpu.memory_space<vmem>>, %arg4: memref<1x8x1xf32, #tpu.memory_space<vmem>>, %arg5: memref<8x32xf32, #tpu.memory_space<vmem>>, %arg6: memref<8x32xf32, #tpu.memory_space<vmem>>, %arg7: memref<1x32xf32, #tpu.memory_space<vmem>>, %arg8: memref<1x32xf32, #tpu.memory_space<vmem>>, %arg9: memref<1x32xf32, #tpu.memory_space<vmem>>, %arg10: memref<1x32xf32, #tpu.memory_space<vmem>>, %arg11: memref<1x8x32xf32, #tpu.memory_space<vmem>>, %arg12: memref<8x32xf32, #tpu.memory_space<vmem>>) attributes {dimension_semantics = [#tpu.dimension_semantics<parallel>], iteration_bounds = array<i64: 2>, scalar_prefetch = 1 : i64, scratch_operands = 1 : i64, tpu.core_type = #tpu.core_type<tc>, window_params = [{pipeline_mode = #tpu.pipeline_mode<synchronous>, transform_indices = @transform_0, window_bounds = array<i64: 16, 32>}, {transform_indices = @transform_1, window_bounds = array<i64: 1, 12, 32>}, {transform_indices = @transform_2, window_bounds = array<i64: 1, 8, 1>}, {pipeline_mode = #tpu.pipeline_mode<synchronous>, transform_indices = @transform_3, window_bounds = array<i64: 8, 32>}, {pipeline_mode = #tpu.pipeline_mode<synchronous>, transform_indices = @transform_4, window_bounds = array<i64: 8, 32>}, {pipeline_mode = #tpu.pipeline_mode<synchronous>, transform_indices = @transform_5, window_bounds = array<i64: 1, 32>}, {pipeline_mode = #tpu.pipeline_mode<synchronous>, transform_indices = @transform_6, window_bounds = array<i64: 1, 32>}, {pipeline_mode = #tpu.pipeline_mode<synchronous>, transform_indices = @transform_7, window_bounds = array<i64: 1, 32>}, {pipeline_mode = #tpu.pipeline_mode<synchronous>, transform_indices = @transform_8, window_bounds = array<i64: 1, 32>}, {transform_indices = @transform_9, window_bounds = array<i64: 1, 8, 32>}]} {
    %0 = arith.index_cast %arg0 : i32 to index
    %c0 = arith.constant 0 : index
    %1 = memref.load %arg1[%0, %c0] : memref<2x8xi32, #tpu.memory_space<smem>>
    %c16_i32 = arith.constant 16 : i32
    %2 = arith.cmpi sge, %1, %c16_i32 : i32
    %c0_i32 = arith.constant 0 : i32
    %c15_i32 = arith.constant 15 : i32
    %3 = arith.maxsi %c0_i32, %1 : i32
    %4 = arith.minsi %c15_i32, %3 : i32
    %c16_i32_0 = arith.constant 16 : i32
    %5 = arith.subi %1, %c16_i32_0 : i32
    %c0_i32_1 = arith.constant 0 : i32
    %c11_i32 = arith.constant 11 : i32
    %6 = arith.maxsi %c0_i32_1, %5 : i32
    %7 = arith.minsi %c11_i32, %6 : i32
    %8 = arith.index_cast %4 : i32 to index
    %c0_2 = arith.constant 0 : index
    %9 = vector.load %arg2[%8, %c0_2] : memref<16x32xf32, #tpu.memory_space<vmem>>, vector<1x32xf32>
    %c0_3 = arith.constant 0 : index
    %10 = arith.index_cast %7 : i32 to index
    %c0_4 = arith.constant 0 : index
    %11 = vector.load %arg3[%c0_3, %10, %c0_4] : memref<1x12x32xf32, #tpu.memory_space<vmem>>, vector<1x1x32xf32>
    %12 = vector.shape_cast %11 : vector<1x1x32xf32> to vector<1x32xf32>
    %13 = arith.select %2, %12, %9 : vector<1x32xf32>
    %c0_5 = arith.constant 0 : index
    %c0_6 = arith.constant 0 : index
    %14 = vector.load %arg12[%c0_5, %c0_6] : memref<8x32xf32, #tpu.memory_space<vmem>>, vector<1x32xf32>
    tpu.vector_store %arg12[%c0_5, %c0_6], %13 {strides = array<i32>} : memref<8x32xf32, #tpu.memory_space<vmem>>, vector<1x32xf32>,
    %15 = arith.index_cast %arg0 : i32 to index
    %c1 = arith.constant 1 : index
    %16 = memref.load %arg1[%15, %c1] : memref<2x8xi32, #tpu.memory_space<smem>>
    %c16_i32_7 = arith.constant 16 : i32
    %17 = arith.cmpi sge, %16, %c16_i32_7 : i32
    %c0_i32_8 = arith.constant 0 : i32
    %c15_i32_9 = arith.constant 15 : i32
    %18 = arith.maxsi %c0_i32_8, %16 : i32
    %19 = arith.minsi %c15_i32_9, %18 : i32
    %c16_i32_10 = arith.constant 16 : i32
    %20 = arith.subi %16, %c16_i32_10 : i32
    %c0_i32_11 = arith.constant 0 : i32
    %c11_i32_12 = arith.constant 11 : i32
    %21 = arith.maxsi %c0_i32_11, %20 : i32
    %22 = arith.minsi %c11_i32_12, %21 : i32
    %23 = arith.index_cast %19 : i32 to index
    %c0_13 = arith.constant 0 : index
    %24 = vector.load %arg2[%23, %c0_13] : memref<16x32xf32, #tpu.memory_space<vmem>>, vector<1x32xf32>
    %c0_14 = arith.constant 0 : index
    %25 = arith.index_cast %22 : i32 to index
    %c0_15 = arith.constant 0 : index
    %26 = vector.load %arg3[%c0_14, %25, %c0_15] : memref<1x12x32xf32, #tpu.memory_space<vmem>>, vector<1x1x32xf32>
    %27 = vector.shape_cast %26 : vector<1x1x32xf32> to vector<1x32xf32>
    %28 = arith.select %17, %27, %24 : vector<1x32xf32>
    %c1_16 = arith.constant 1 : index
    %c0_17 = arith.constant 0 : index
    %29 = vector.load %arg12[%c1_16, %c0_17] : memref<8x32xf32, #tpu.memory_space<vmem>>, vector<1x32xf32>
    tpu.vector_store %arg12[%c1_16, %c0_17], %28 {strides = array<i32>} : memref<8x32xf32, #tpu.memory_space<vmem>>, vector<1x32xf32>,
    %30 = arith.index_cast %arg0 : i32 to index
    %c2 = arith.constant 2 : index
    %31 = memref.load %arg1[%30, %c2] : memref<2x8xi32, #tpu.memory_space<smem>>
    %c16_i32_18 = arith.constant 16 : i32
    %32 = arith.cmpi sge, %31, %c16_i32_18 : i32
    %c0_i32_19 = arith.constant 0 : i32
    %c15_i32_20 = arith.constant 15 : i32
    %33 = arith.maxsi %c0_i32_19, %31 : i32
    %34 = arith.minsi %c15_i32_20, %33 : i32
    %c16_i32_21 = arith.constant 16 : i32
    %35 = arith.subi %31, %c16_i32_21 : i32
    %c0_i32_22 = arith.constant 0 : i32
    %c11_i32_23 = arith.constant 11 : i32
    %36 = arith.maxsi %c0_i32_22, %35 : i32
    %37 = arith.minsi %c11_i32_23, %36 : i32
    %38 = arith.index_cast %34 : i32 to index
    %c0_24 = arith.constant 0 : index
    %39 = vector.load %arg2[%38, %c0_24] : memref<16x32xf32, #tpu.memory_space<vmem>>, vector<1x32xf32>
    %c0_25 = arith.constant 0 : index
    %40 = arith.index_cast %37 : i32 to index
    %c0_26 = arith.constant 0 : index
    %41 = vector.load %arg3[%c0_25, %40, %c0_26] : memref<1x12x32xf32, #tpu.memory_space<vmem>>, vector<1x1x32xf32>
    %42 = vector.shape_cast %41 : vector<1x1x32xf32> to vector<1x32xf32>
    %43 = arith.select %32, %42, %39 : vector<1x32xf32>
    %c2_27 = arith.constant 2 : index
    %c0_28 = arith.constant 0 : index
    %44 = vector.load %arg12[%c2_27, %c0_28] : memref<8x32xf32, #tpu.memory_space<vmem>>, vector<1x32xf32>
    tpu.vector_store %arg12[%c2_27, %c0_28], %43 {strides = array<i32>} : memref<8x32xf32, #tpu.memory_space<vmem>>, vector<1x32xf32>,
    %45 = arith.index_cast %arg0 : i32 to index
    %c3 = arith.constant 3 : index
    %46 = memref.load %arg1[%45, %c3] : memref<2x8xi32, #tpu.memory_space<smem>>
    %c16_i32_29 = arith.constant 16 : i32
    %47 = arith.cmpi sge, %46, %c16_i32_29 : i32
    %c0_i32_30 = arith.constant 0 : i32
    %c15_i32_31 = arith.constant 15 : i32
    %48 = arith.maxsi %c0_i32_30, %46 : i32
    %49 = arith.minsi %c15_i32_31, %48 : i32
    %c16_i32_32 = arith.constant 16 : i32
    %50 = arith.subi %46, %c16_i32_32 : i32
    %c0_i32_33 = arith.constant 0 : i32
    %c11_i32_34 = arith.constant 11 : i32
    %51 = arith.maxsi %c0_i32_33, %50 : i32
    %52 = arith.minsi %c11_i32_34, %51 : i32
    %53 = arith.index_cast %49 : i32 to index
    %c0_35 = arith.constant 0 : index
    %54 = vector.load %arg2[%53, %c0_35] : memref<16x32xf32, #tpu.memory_space<vmem>>, vector<1x32xf32>
    %c0_36 = arith.constant 0 : index
    %55 = arith.index_cast %52 : i32 to index
    %c0_37 = arith.constant 0 : index
    %56 = vector.load %arg3[%c0_36, %55, %c0_37] : memref<1x12x32xf32, #tpu.memory_space<vmem>>, vector<1x1x32xf32>
    %57 = vector.shape_cast %56 : vector<1x1x32xf32> to vector<1x32xf32>
    %58 = arith.select %47, %57, %54 : vector<1x32xf32>
    %c3_38 = arith.constant 3 : index
    %c0_39 = arith.constant 0 : index
    %59 = vector.load %arg12[%c3_38, %c0_39] : memref<8x32xf32, #tpu.memory_space<vmem>>, vector<1x32xf32>
    tpu.vector_store %arg12[%c3_38, %c0_39], %58 {strides = array<i32>} : memref<8x32xf32, #tpu.memory_space<vmem>>, vector<1x32xf32>,
    %60 = arith.index_cast %arg0 : i32 to index
    %c4 = arith.constant 4 : index
    %61 = memref.load %arg1[%60, %c4] : memref<2x8xi32, #tpu.memory_space<smem>>
    %c16_i32_40 = arith.constant 16 : i32
    %62 = arith.cmpi sge, %61, %c16_i32_40 : i32
    %c0_i32_41 = arith.constant 0 : i32
    %c15_i32_42 = arith.constant 15 : i32
    %63 = arith.maxsi %c0_i32_41, %61 : i32
    %64 = arith.minsi %c15_i32_42, %63 : i32
    %c16_i32_43 = arith.constant 16 : i32
    %65 = arith.subi %61, %c16_i32_43 : i32
    %c0_i32_44 = arith.constant 0 : i32
    %c11_i32_45 = arith.constant 11 : i32
    %66 = arith.maxsi %c0_i32_44, %65 : i32
    %67 = arith.minsi %c11_i32_45, %66 : i32
    %68 = arith.index_cast %64 : i32 to index
    %c0_46 = arith.constant 0 : index
    %69 = vector.load %arg2[%68, %c0_46] : memref<16x32xf32, #tpu.memory_space<vmem>>, vector<1x32xf32>
    %c0_47 = arith.constant 0 : index
    %70 = arith.index_cast %67 : i32 to index
    %c0_48 = arith.constant 0 : index
    %71 = vector.load %arg3[%c0_47, %70, %c0_48] : memref<1x12x32xf32, #tpu.memory_space<vmem>>, vector<1x1x32xf32>
    %72 = vector.shape_cast %71 : vector<1x1x32xf32> to vector<1x32xf32>
    %73 = arith.select %62, %72, %69 : vector<1x32xf32>
    %c4_49 = arith.constant 4 : index
    %c0_50 = arith.constant 0 : index
    %74 = vector.load %arg12[%c4_49, %c0_50] : memref<8x32xf32, #tpu.memory_space<vmem>>, vector<1x32xf32>
    tpu.vector_store %arg12[%c4_49, %c0_50], %73 {strides = array<i32>} : memref<8x32xf32, #tpu.memory_space<vmem>>, vector<1x32xf32>,
    %75 = arith.index_cast %arg0 : i32 to index
    %c5 = arith.constant 5 : index
    %76 = memref.load %arg1[%75, %c5] : memref<2x8xi32, #tpu.memory_space<smem>>
    %c16_i32_51 = arith.constant 16 : i32
    %77 = arith.cmpi sge, %76, %c16_i32_51 : i32
    %c0_i32_52 = arith.constant 0 : i32
    %c15_i32_53 = arith.constant 15 : i32
    %78 = arith.maxsi %c0_i32_52, %76 : i32
    %79 = arith.minsi %c15_i32_53, %78 : i32
    %c16_i32_54 = arith.constant 16 : i32
    %80 = arith.subi %76, %c16_i32_54 : i32
    %c0_i32_55 = arith.constant 0 : i32
    %c11_i32_56 = arith.constant 11 : i32
    %81 = arith.maxsi %c0_i32_55, %80 : i32
    %82 = arith.minsi %c11_i32_56, %81 : i32
    %83 = arith.index_cast %79 : i32 to index
    %c0_57 = arith.constant 0 : index
    %84 = vector.load %arg2[%83, %c0_57] : memref<16x32xf32, #tpu.memory_space<vmem>>, vector<1x32xf32>
    %c0_58 = arith.constant 0 : index
    %85 = arith.index_cast %82 : i32 to index
    %c0_59 = arith.constant 0 : index
    %86 = vector.load %arg3[%c0_58, %85, %c0_59] : memref<1x12x32xf32, #tpu.memory_space<vmem>>, vector<1x1x32xf32>
    %87 = vector.shape_cast %86 : vector<1x1x32xf32> to vector<1x32xf32>
    %88 = arith.select %77, %87, %84 : vector<1x32xf32>
    %c5_60 = arith.constant 5 : index
    %c0_61 = arith.constant 0 : index
    %89 = vector.load %arg12[%c5_60, %c0_61] : memref<8x32xf32, #tpu.memory_space<vmem>>, vector<1x32xf32>
    tpu.vector_store %arg12[%c5_60, %c0_61], %88 {strides = array<i32>} : memref<8x32xf32, #tpu.memory_space<vmem>>, vector<1x32xf32>,
    %90 = arith.index_cast %arg0 : i32 to index
    %c6 = arith.constant 6 : index
    %91 = memref.load %arg1[%90, %c6] : memref<2x8xi32, #tpu.memory_space<smem>>
    %c16_i32_62 = arith.constant 16 : i32
    %92 = arith.cmpi sge, %91, %c16_i32_62 : i32
    %c0_i32_63 = arith.constant 0 : i32
    %c15_i32_64 = arith.constant 15 : i32
    %93 = arith.maxsi %c0_i32_63, %91 : i32
    %94 = arith.minsi %c15_i32_64, %93 : i32
    %c16_i32_65 = arith.constant 16 : i32
    %95 = arith.subi %91, %c16_i32_65 : i32
    %c0_i32_66 = arith.constant 0 : i32
    %c11_i32_67 = arith.constant 11 : i32
    %96 = arith.maxsi %c0_i32_66, %95 : i32
    %97 = arith.minsi %c11_i32_67, %96 : i32
    %98 = arith.index_cast %94 : i32 to index
    %c0_68 = arith.constant 0 : index
    %99 = vector.load %arg2[%98, %c0_68] : memref<16x32xf32, #tpu.memory_space<vmem>>, vector<1x32xf32>
    %c0_69 = arith.constant 0 : index
    %100 = arith.index_cast %97 : i32 to index
    %c0_70 = arith.constant 0 : index
    %101 = vector.load %arg3[%c0_69, %100, %c0_70] : memref<1x12x32xf32, #tpu.memory_space<vmem>>, vector<1x1x32xf32>
    %102 = vector.shape_cast %101 : vector<1x1x32xf32> to vector<1x32xf32>
    %103 = arith.select %92, %102, %99 : vector<1x32xf32>
    %c6_71 = arith.constant 6 : index
    %c0_72 = arith.constant 0 : index
    %104 = vector.load %arg12[%c6_71, %c0_72] : memref<8x32xf32, #tpu.memory_space<vmem>>, vector<1x32xf32>
    tpu.vector_store %arg12[%c6_71, %c0_72], %103 {strides = array<i32>} : memref<8x32xf32, #tpu.memory_space<vmem>>, vector<1x32xf32>,
    %105 = arith.index_cast %arg0 : i32 to index
    %c7 = arith.constant 7 : index
    %106 = memref.load %arg1[%105, %c7] : memref<2x8xi32, #tpu.memory_space<smem>>
    %c16_i32_73 = arith.constant 16 : i32
    %107 = arith.cmpi sge, %106, %c16_i32_73 : i32
    %c0_i32_74 = arith.constant 0 : i32
    %c15_i32_75 = arith.constant 15 : i32
    %108 = arith.maxsi %c0_i32_74, %106 : i32
    %109 = arith.minsi %c15_i32_75, %108 : i32
    %c16_i32_76 = arith.constant 16 : i32
    %110 = arith.subi %106, %c16_i32_76 : i32
    %c0_i32_77 = arith.constant 0 : i32
    %c11_i32_78 = arith.constant 11 : i32
    %111 = arith.maxsi %c0_i32_77, %110 : i32
    %112 = arith.minsi %c11_i32_78, %111 : i32
    %113 = arith.index_cast %109 : i32 to index
    %c0_79 = arith.constant 0 : index
    %114 = vector.load %arg2[%113, %c0_79] : memref<16x32xf32, #tpu.memory_space<vmem>>, vector<1x32xf32>
    %c0_80 = arith.constant 0 : index
    %115 = arith.index_cast %112 : i32 to index
    %c0_81 = arith.constant 0 : index
    %116 = vector.load %arg3[%c0_80, %115, %c0_81] : memref<1x12x32xf32, #tpu.memory_space<vmem>>, vector<1x1x32xf32>
    %117 = vector.shape_cast %116 : vector<1x1x32xf32> to vector<1x32xf32>
    %118 = arith.select %107, %117, %114 : vector<1x32xf32>
    %c7_82 = arith.constant 7 : index
    %c0_83 = arith.constant 0 : index
    %119 = vector.load %arg12[%c7_82, %c0_83] : memref<8x32xf32, #tpu.memory_space<vmem>>, vector<1x32xf32>
    tpu.vector_store %arg12[%c7_82, %c0_83], %118 {strides = array<i32>} : memref<8x32xf32, #tpu.memory_space<vmem>>, vector<1x32xf32>,
    %c0_84 = arith.constant 0 : index
    %c0_85 = arith.constant 0 : index
    %120 = vector.load %arg12[%c0_84, %c0_85] : memref<8x32xf32, #tpu.memory_space<vmem>>, vector<8x32xf32>
    %c0_86 = arith.constant 0 : index
    %c0_87 = arith.constant 0 : index
    %c0_88 = arith.constant 0 : index
    %121 = vector.load %arg4[%c0_86, %c0_87, %c0_88] : memref<1x8x1xf32, #tpu.memory_space<vmem>>, vector<1x8x1xf32>
    %122 = vector.shape_cast %121 : vector<1x8x1xf32> to vector<8x1xf32>
    %c0_89 = arith.constant 0 : index
    %c0_90 = arith.constant 0 : index
    %123 = vector.load %arg7[%c0_89, %c0_90] : memref<1x32xf32, #tpu.memory_space<vmem>>, vector<1x32xf32>
    %c0_91 = arith.constant 0 : index
    %c0_92 = arith.constant 0 : index
    %124 = vector.load %arg9[%c0_91, %c0_92] : memref<1x32xf32, #tpu.memory_space<vmem>>, vector<1x32xf32>
    %c0_93 = arith.constant 0 : index
    %c0_94 = arith.constant 0 : index
    %125 = vector.load %arg7[%c0_93, %c0_94] : memref<1x32xf32, #tpu.memory_space<vmem>>, vector<1x32xf32>
    %126 = arith.subf %124, %125 : vector<1x32xf32>
    %127 = vector.broadcast %122 : vector<8x1xf32> to vector<8x32xf32>
    %128 = vector.broadcast %126 : vector<1x32xf32> to vector<8x32xf32>
    %129 = arith.mulf %127, %128 : vector<8x32xf32>
    %130 = vector.broadcast %123 : vector<1x32xf32> to vector<8x32xf32>
    %131 = arith.addf %130, %129 : vector<8x32xf32>
    %c0_95 = arith.constant 0 : index
    %c0_96 = arith.constant 0 : index
    %132 = vector.load %arg8[%c0_95, %c0_96] : memref<1x32xf32, #tpu.memory_space<vmem>>, vector<1x32xf32>
    %c0_97 = arith.constant 0 : index
    %c0_98 = arith.constant 0 : index
    %133 = vector.load %arg10[%c0_97, %c0_98] : memref<1x32xf32, #tpu.memory_space<vmem>>, vector<1x32xf32>
    %c0_99 = arith.constant 0 : index
    %c0_100 = arith.constant 0 : index
    %134 = vector.load %arg8[%c0_99, %c0_100] : memref<1x32xf32, #tpu.memory_space<vmem>>, vector<1x32xf32>
    %135 = arith.subf %133, %134 : vector<1x32xf32>
    %136 = vector.broadcast %122 : vector<8x1xf32> to vector<8x32xf32>
    %137 = vector.broadcast %135 : vector<1x32xf32> to vector<8x32xf32>
    %138 = arith.mulf %136, %137 : vector<8x32xf32>
    %139 = vector.broadcast %132 : vector<1x32xf32> to vector<8x32xf32>
    %140 = arith.addf %139, %138 : vector<8x32xf32>
    %cst = arith.constant dense<0.000000e+00> : vector<8xf32>
    %141 = vector.multi_reduction <add>, %120, %cst [1] : vector<8x32xf32> to vector<8xf32>
    %142 = vector.shape_cast %141 : vector<8xf32> to vector<8x1xf32>
    %cst_101 = arith.constant 3.200000e+01 : f32
    %143 = vector.broadcast %cst_101 : f32 to vector<8x1xf32>
    %144 = arith.divf %142, %143 : vector<8x1xf32>
    %145 = vector.broadcast %144 : vector<8x1xf32> to vector<8x32xf32>
    %146 = arith.subf %120, %145 : vector<8x32xf32>
    %147 = arith.mulf %146, %146 : vector<8x32xf32>
    %cst_102 = arith.constant dense<0.000000e+00> : vector<8xf32>
    %148 = vector.multi_reduction <add>, %147, %cst_102 [1] : vector<8x32xf32> to vector<8xf32>
    %149 = vector.shape_cast %148 : vector<8xf32> to vector<8x1xf32>
    %cst_103 = arith.constant 3.200000e+01 : f32
    %150 = vector.broadcast %cst_103 : f32 to vector<8x1xf32>
    %151 = arith.divf %149, %150 : vector<8x1xf32>
    %152 = vector.broadcast %144 : vector<8x1xf32> to vector<8x32xf32>
    %153 = arith.subf %120, %152 : vector<8x32xf32>
    %cst_104 = arith.constant 9.99999996E-13 : f32
    %154 = vector.broadcast %cst_104 : f32 to vector<8x1xf32>
    %155 = arith.addf %151, %154 : vector<8x1xf32>
    %156 = math.rsqrt %155 : vector<8x1xf32>
    %157 = vector.broadcast %156 : vector<8x1xf32> to vector<8x32xf32>
    %158 = arith.mulf %153, %157 : vector<8x32xf32>
    %159 = arith.mulf %158, %131 : vector<8x32xf32>
    %160 = arith.addf %159, %140 : vector<8x32xf32>
    %c0_105 = arith.constant 0 : index
    %c0_106 = arith.constant 0 : index
    %161 = vector.load %arg5[%c0_105, %c0_106] : memref<8x32xf32, #tpu.memory_space<vmem>>, vector<8x32xf32>
    %c0_107 = arith.constant 0 : index
    %c0_108 = arith.constant 0 : index
    %162 = vector.load %arg6[%c0_107, %c0_108] : memref<8x32xf32, #tpu.memory_space<vmem>>, vector<8x32xf32>
    %c0_109 = arith.constant 0 : index
    %c0_110 = arith.constant 0 : index
    %163 = vector.load %arg5[%c0_109, %c0_110] : memref<8x32xf32, #tpu.memory_space<vmem>>, vector<8x32xf32>
    %164 = arith.subf %162, %163 : vector<8x32xf32>
    %165 = vector.broadcast %122 : vector<8x1xf32> to vector<8x32xf32>
    %166 = arith.mulf %165, %164 : vector<8x32xf32>
    %167 = arith.addf %161, %166 : vector<8x32xf32>
    %168 = arith.addf %160, %167 : vector<8x32xf32>
    %c0_111 = arith.constant 0 : index
    %c0_112 = arith.constant 0 : index
    %c0_113 = arith.constant 0 : index
    %169 = vector.load %arg11[%c0_111, %c0_112, %c0_113] : memref<1x8x32xf32, #tpu.memory_space<vmem>>, vector<1x8x32xf32>
    %170 = vector.shape_cast %169 : vector<1x8x32xf32> to vector<8x32xf32>
    %171 = vector.shape_cast %168 : vector<8x32xf32> to vector<1x8x32xf32>
    tpu.vector_store %arg11[%c0_111, %c0_112, %c0_113], %171 {strides = array<i32>} : memref<1x8x32xf32, #tpu.memory_space<vmem>>, vector<1x8x32xf32>,
    return
  }
  func.func @transform_0(%arg0: i32, %arg1: memref<2x8xi32, #tpu.memory_space<smem>>) -> (i32, i32) {
    %c0_i32 = arith.constant 0 : i32
    %c0_i32_0 = arith.constant 0 : i32
    %c0_i32_1 = arith.constant 0 : i32
    return %c0_i32, %c0_i32_0 : i32, i32
  }
  func.func @transform_1(%arg0: i32, %arg1: memref<2x8xi32, #tpu.memory_space<smem>>) -> (i32, i32, i32) {
    %c0_i32 = arith.constant 0 : i32
    %c0_i32_0 = arith.constant 0 : i32
    %c0_i32_1 = arith.constant 0 : i32
    return %arg0, %c0_i32, %c0_i32_0 : i32, i32, i32
  }
  func.func @transform_2(%arg0: i32, %arg1: memref<2x8xi32, #tpu.memory_space<smem>>) -> (i32, i32, i32) {
    %c0_i32 = arith.constant 0 : i32
    %c0_i32_0 = arith.constant 0 : i32
    %c0_i32_1 = arith.constant 0 : i32
    return %arg0, %c0_i32, %c0_i32_0 : i32, i32, i32
  }
  func.func @transform_3(%arg0: i32, %arg1: memref<2x8xi32, #tpu.memory_space<smem>>) -> (i32, i32) {
    %c0_i32 = arith.constant 0 : i32
    %c0_i32_0 = arith.constant 0 : i32
    %c0_i32_1 = arith.constant 0 : i32
    return %c0_i32, %c0_i32_0 : i32, i32
  }
  func.func @transform_4(%arg0: i32, %arg1: memref<2x8xi32, #tpu.memory_space<smem>>) -> (i32, i32) {
    %c0_i32 = arith.constant 0 : i32
    %c0_i32_0 = arith.constant 0 : i32
    %c0_i32_1 = arith.constant 0 : i32
    return %c0_i32, %c0_i32_0 : i32, i32
  }
  func.func @transform_5(%arg0: i32, %arg1: memref<2x8xi32, #tpu.memory_space<smem>>) -> (i32, i32) {
    %c0_i32 = arith.constant 0 : i32
    %c0_i32_0 = arith.constant 0 : i32
    %c0_i32_1 = arith.constant 0 : i32
    return %c0_i32, %c0_i32_0 : i32, i32
  }
  func.func @transform_6(%arg0: i32, %arg1: memref<2x8xi32, #tpu.memory_space<smem>>) -> (i32, i32) {
    %c0_i32 = arith.constant 0 : i32
    %c0_i32_0 = arith.constant 0 : i32
    %c0_i32_1 = arith.constant 0 : i32
    return %c0_i32, %c0_i32_0 : i32, i32
  }
  func.func @transform_7(%arg0: i32, %arg1: memref<2x8xi32, #tpu.memory_space<smem>>) -> (i32, i32) {
    %c0_i32 = arith.constant 0 : i32
    %c0_i32_0 = arith.constant 0 : i32
    %c0_i32_1 = arith.constant 0 : i32
    return %c0_i32, %c0_i32_0 : i32, i32
  }
  func.func @transform_8(%arg0: i32, %arg1: memref<2x8xi32, #tpu.memory_space<smem>>) -> (i32, i32) {
    %c0_i32 = arith.constant 0 : i32
    %c0_i32_0 = arith.constant 0 : i32
    %c0_i32_1 = arith.constant 0 : i32
    return %c0_i32, %c0_i32_0 : i32, i32
  }
  func.func @transform_9(%arg0: i32, %arg1: memref<2x8xi32, #tpu.memory_space<smem>>) -> (i32, i32, i32) {
    %c0_i32 = arith.constant 0 : i32
    %c0_i32_0 = arith.constant 0 : i32
    %c0_i32_1 = arith.constant 0 : i32
    return %arg0, %c0_i32, %c0_i32_0 : i32, i32, i32
  }
}

</mosaic_0001>

<bundles_post_ra>
// kernel: tpu_custom_call.1
= control target key start
LH: loop header
LB: loop body
LE: loop exit
PB: predicated region body
PF: predicated region fallthrough
CT: control target
= control target key end

     0   :  { %s1217_s0 = inlined_call_operand.vmem [shape: s32[2,8], index: 0, kind: input, shape index: {}]   ;;  %s1218_s1 = inlined_call_operand.vmem [shape: f32[16,32], index: 1, kind: input, shape index: {}]   ;;  %s1219_s2 = inlined_call_operand.vmem [shape: f32[2,12,32], index: 2, kind: input, shape index: {}]   ;;  %s1220_s3 = inlined_call_operand.vmem [shape: f32[2,8,1], index: 3, kind: input, shape index: {}]   ;;  %s1221_s4 = inlined_call_operand.vmem [shape: f32[8,32], index: 4, kind: input, shape index: {}]   ;;  %s1222_s5 = inlined_call_operand.vmem [shape: f32[8,32], index: 5, kind: input, shape index: {}]   ;;  %s1223_s6 = inlined_call_operand.vmem [shape: f32[1,32], index: 6, kind: input, shape index: {}]   ;;  %s1224_s7 = inlined_call_operand.vmem [shape: f32[1,32], index: 7, kind: input, shape index: {}]   ;;  %s1225_s8 = inlined_call_operand.vmem [shape: f32[1,32], index: 8, kind: input, shape index: {}]   ;;  %s1226_s9 = inlined_call_operand.vmem [shape: f32[1,32], index: 9, kind: input, shape index: {}]   ;;  %s1227_s10 = inlined_call_operand.hbm [shape: f32[2,8,32], index: 10, kind: output, shape index: {}]  }
   0x1   :  { %1232 = sst [smem:[#allocation13_spill]] %s1219_s2  ;;  %s15_s15 = sshll.u32 %s1217_s0, 4  ;;  %s16_s15 = int_to_ptr.vmem [resolvable:$true] %s15_s15 }
   0x2   :  { %s869_s16 = scalar_lea.vmem %s16_s15, 32  ;;  %p874_p1 = scmp.lt.s32.totalorder %s16_s15, %s16_s15 }
   0x3   :  { %p870_p0 = scmp.ne.s32.totalorder %s16_s15, %s869_s16  ;;  %p875_p2 = scmp.lt.s32.totalorder %s869_s16, %s869_s16 }
   0x5   :  { %p876_p3 = por %p875_p2, %p874_p1 }
   0x7   :  { %p877_p4 = pnand %p876_p3, %p870_p0 }
   0x9   :  { %880 = shalt.err (!%p877_p4)  }
   0xa   :  { %s945_s17 = smov [#allocation4]  }
   0xb   :  { %18 = dma.vmem_to_smem %s16_s15, 32, %s945_s17, [#allocation3] }
   0xc   :  { %923 = dma.done.wait [#allocation3], 32 }
   0xd   :  { %924 = vsyncadd [#allocation3], 4294967264 }
   0xe   :  { %20 = sfence }
   0xf   :  { %21 = vsyncpa [#allocation6], 0 }
  0x10   :  { %23 = vsyncpa [#allocation6 + $0x1], 0  ;;  %s1006_s18 = smov 0   ;;  %s1008_s19 = smov 0  }
  0x11   :  { %s1010_s0 = smov 0   ;;  %s1012_s20 = smov 0  }
  0x12 LB: > { %1233 = sst [smem:[#allocation9_spill]] %s939_s0  ;;  %s689_s21 = sadd.s32 4294967295, %s943_s20   ;;  %s943_s20 = sphi %s1012_s20, %s1242_s20   ;;  %s939_s0 = sphi %s1010_s0, %s1244_s0   ;;  %s935_s19 = sphi %s1008_s19, %s1246_s19   ;;  %s931_s18 = sphi %s1006_s18, %s1245_s18  }
  0x13   : > { %s690_s22 = sadd.s32 4294967294, %s943_s20   ;;  %s1029_s23 = sadd.s32 1, %s943_s20  }
  0x14   : > { %1234 = sst [smem:[#allocation10_spill]] %s1029_s23  ;;  %s235_s24 = sadd.s32 1, %s939_s0 }
  0x15   : > { %s232_s25 = ssub.s32 %s943_s20, %s1029_s23  ;;  %p245_p5 = scmp.ne.s32.totalorder %s939_s0, %s935_s19 }
  0x16   : > { %p233_p6 = scmp.eq.s32.totalorder %s232_s25, 0  ;;  %p246_p7 = scmp.eq.s32.totalorder %s689_s21, 1 }
  0x17   : > { %p251_p8 = scmp.ne.s32.totalorder %s935_s19, %s931_s18  ;;  %p252_p9 = scmp.eq.s32.totalorder %s690_s22, 1 }
  0x18   : > { %s1039_s26 = scalar_select %p233_p6, %s939_s0, %s235_s24  }
  0x19   : > { %p1041_p10 = por %p246_p7, %p245_p5  ;;  %p1045_p11 = por %p252_p9, %p251_p8 }
  0x1a   : > { %1235 = sst [smem:[#allocation11_spill]] %s1039_s26  ;;  %p693_p12 = scmp.ge.s32.totalorder %s943_s20, 1 }
  0x1b   : > { %s1237_s28 = scalar_select %p1045_p11, 1, 0 }
  0x1c   : > { %p306_p13 = scmp.lt.s32.totalorder %s943_s20, 3 }
  0x1d   : > { %1238 = sst [smem:[#allocation12_spill]] %s1237_s28 }
  0x1e   : > { %p307_p0 = pnand %p693_p12, %p306_p13 }
  0x1f   : > { %p346_p1 = scmp.lt.s32.totalorder (!%p307_p0), %s689_s21, 1  ;;  %s1051_s29 = sshll.u32 (!%p307_p0), %s689_s21, 7 }
  0x20   : > { %310 = sbr.rel (%p307_p0) target bundleno = 439 (0x1b7), region = 56  ;;  %s356_s30 = sld [smem:[#allocation4 + %s1051_s29]] (!%p307_p0) }
  0x21   : > { %s377_s11 = sadd.s32 (!%p307_p0), 1, %s1051_s29  ;;  %s398_s13 = sadd.s32 (!%p307_p0), 2, %s1051_s29 }
  0x22   : > { %s1057_s12 = sld [smem:[#allocation4 + %s377_s11]] (!%p307_p0)  ;;  %s419_s24 = sadd.s32 (!%p307_p0), 3, %s1051_s29 }
  0x23   : > { %s1061_s15 = sld [smem:[#allocation4 + %s398_s13]] (!%p307_p0)  ;;  %s482_s0 = sadd.s32 (!%p307_p0), 6, %s1051_s29 }
  0x24   : > { %s1239_s2 = sld [smem:[#allocation13_spill]] (!%p307_p0)  ;;  %s503_s28 = sadd.s32 (!%p307_p0), 7, %s1051_s29 }
  0x25   : > { %s1248_s21 = smov (!%p346_p1, %s689_s21), 1  ;;  %s1069_s25 = sld [smem:[#allocation4 + %s419_s24]]  ;;  %vm375_vm0 = vcmask 253952   ;;  %vm565_vm9 = vcmask 261120   ;;  %v946_v34 = vmov 0   ;;  %v535_v41 = vlaneseq  ;;  %v582_v55 = vld [vmem:[%s1221_s4] sm:$0xff] }
  0x26   : > { %s791_s14 = sshll.u32 %s1248_s21, 4  ;;  %p357_p2 = scmp.ge.s32.totalorder %s356_s30, 16  ;;  %865 = vset.pattern.permute.xlu1 %v946_v34  ;;  %866 = vset.pattern.permute.xlu0 %v946_v34  ;;  %v526_v45 = vld [vmem:[%s1223_s6] sm:$0x1] }
  0x27   : > { %p358_p3 = scmp.gt.s32.totalorder %s356_s30, 0  ;;  %p699_p4 = scmp.lt.s32.totalorder %s356_s30, 15  ;;  %v536_v44 = vshrl.u32 %v535_v41, 7  ;;  %v527_v46 = vld [vmem:[%s1225_s8] sm:$0x1] }
  0x28   : > { %s704_s11 = sadd.s32 4294967280, %s356_s30  ;;  %p379_p7 = scmp.ge.s32.totalorder %s1057_s12, 16  ;;  %v528_v48 = vsub.f32 %v527_v46, %v526_v45  ;;  %v548_v50 = vld [vmem:[%s1224_s7] sm:$0x1] }
  0x29   : > { %s1250_s30 = smov (!%p358_p3, %s356_s30), 0  ;;  %p363_p5 = scmp.gt.s32.totalorder %s704_s11, 0  ;;  %v537_v49 = vsub.s32 0, %v536_v44  ;;  %v549_v51 = vld [vmem:[%s1226_s9] sm:$0x1] }
  0x2a   : > { %s1066_s22 = scalar_lea.vmem %s1239_s2, %s791_s14  ;;  %p705_p6 = scmp.lt.s32.totalorder %s704_s11, 11  ;;  %v550_v53 = vsub.f32 %v549_v51, %v548_v50  ;;  %v583_v56 = vld [vmem:[%s1222_s5] sm:$0xff] }
  0x2b   : > { %s1252_s30 = smov (!%p699_p4, %s1250_s30), 15  ;;  %s1254_s11 = smov (!%p363_p5, %s704_s11), 0  ;;  %v538_v52 = vrot.slane %v528_v48, %v537_v49  ;;  %v545_v57 = vrot.slane %v526_v45, %v537_v49  ;;  %v584_v60 = vsub.f32 %v583_v56, %v582_v55  ;;  %v562_v61 = vrot.slane %v548_v50, %v537_v49 }
  0x2c   : > { %s367_s16 = scalar_lea.vmem %s1218_s1, %s1252_s30  ;;  %s1256_s11 = smov (!%p705_p6, %s1254_s11), 11  ;;  %v555_v58 = vrot.slane %v550_v53, %v537_v49 }
  0x2d   : > { %s371_s17 = scalar_select %p357_p2, 1, 0  ;;  %v368_v0 = vld [vmem:[%s367_s16] sm:$0x1] }
  0x2e   : > { %s369_s24 = scalar_lea.vmem %s1066_s22, %s1256_s11  ;;  %p380_p8 = scmp.gt.s32.totalorder %s1057_s12, 0 }
  0x2f   : > { %v370_v1 = vld [vmem:[%s369_s24] sm:$0x1]  ;;  %v372_v2 = vstv %s371_s17  ;;  %p710_p9 = scmp.lt.s32.totalorder %s1057_s12, 15  ;;  %s715_s26 = sadd.s32 4294967280, %s1057_s12 }
  0x30   : > { %vm373_vm1 = vcmp.eq.s32.totalorder %v372_v2, 1  ;;  %s381_s2 = scalar_select %p380_p8, %s1057_s12, 0 }
  0x31   : > { %v374_v3 = vsel %vm373_vm1, %v370_v1, %v368_v0  ;;  %p385_p12 = scmp.gt.s32.totalorder %s715_s26, 0  ;;  %p716_p13 = scmp.lt.s32.totalorder %s715_s26, 11 }
  0x32   : > { %376 = vst.msk [vmem:[#allocation2] sm:$0x1] %vm375_vm0, %v374_v3  ;;  %s1258_s2 = smov (!%p710_p9, %s381_s2), 15  ;;  %p400_p0 = scmp.ge.s32.totalorder %s1061_s15, 16 }
  0x33   : > { %s1260_s26 = smov (!%p385_p12, %s715_s26), 0  ;;  %s389_s13 = scalar_lea.vmem %s1218_s1, %s1258_s2 }
  0x34   : > { %s1262_s26 = smov (!%p716_p13, %s1260_s26), 11  ;;  %v390_v4 = vld [vmem:[%s389_s13] sm:$0x1]  ;;  %p401_p1 = scmp.gt.s32.totalorder %s1061_s15, 0 }
  0x35   : > { %s393_s14 = scalar_select %p379_p7, 1, 0 }
  0x36   : > { %s391_s16 = scalar_lea.vmem %s1066_s22, %s1262_s26  ;;  %p721_p2 = scmp.lt.s32.totalorder %s1061_s15, 15 }
  0x37   : > { %v392_v5 = vld [vmem:[%s391_s16] sm:$0x1]  ;;  %v394_v6 = vstv %s393_s14  ;;  %s726_s17 = sadd.s32 4294967280, %s1061_s15  ;;  %p421_p5 = scmp.ge.s32.totalorder %s1069_s25, 16 }
  0x38   : > { %vm395_vm2 = vcmp.eq.s32.totalorder %v394_v6, 1  ;;  %s402_s24 = scalar_select %p401_p1, %s1061_s15, 0 }
  0x39   : > { %v396_v7 = vsel %vm395_vm2, %v392_v5, %v390_v4  ;;  %p406_p3 = scmp.gt.s32.totalorder %s726_s17, 0  ;;  %p727_p4 = scmp.lt.s32.totalorder %s726_s17, 11 }
  0x3a   : > { %397 = vst.msk [vmem:[#allocation2 + $0x1] sm:$0x1] %vm375_vm0, %v396_v7  ;;  %s1264_s24 = smov (!%p721_p2, %s402_s24), 15  ;;  %p422_p6 = scmp.gt.s32.totalorder %s1069_s25, 0 }
  0x3b   : > { %s1266_s17 = smov (!%p406_p3, %s726_s17), 0  ;;  %s410_s12 = scalar_lea.vmem %s1218_s1, %s1264_s24 }
  0x3c   : > { %s1268_s17 = smov (!%p727_p4, %s1266_s17), 11  ;;  %v411_v8 = vld [vmem:[%s410_s12] sm:$0x1]  ;;  %p732_p7 = scmp.lt.s32.totalorder %s1069_s25, 15 }
  0x3d   : > { %s414_s30 = scalar_select %p400_p0, 1, 0 }
  0x3e   : > { %s412_s11 = scalar_lea.vmem %s1066_s22, %s1268_s17  ;;  %s737_s13 = sadd.s32 4294967280, %s1069_s25 }
  0x3f   : > { %v413_v9 = vld [vmem:[%s412_s11] sm:$0x1]  ;;  %v415_v10 = vstv %s414_s30  ;;  %s423_s14 = scalar_select %p422_p6, %s1069_s25, 0 }
  0x40   : > { %vm416_vm3 = vcmp.eq.s32.totalorder %v415_v10, 1  ;;  %p427_p8 = scmp.gt.s32.totalorder %s737_s13, 0  ;;  %p738_p9 = scmp.lt.s32.totalorder %s737_s13, 11 }
  0x41   : > { %v417_v11 = vsel %vm416_vm3, %v413_v9, %v411_v8  ;;  %s1270_s14 = smov (!%p732_p7, %s423_s14), 15  ;;  %s1240_s24 = sadd.s32 4, %s1051_s29 }
  0x42   : > { %418 = vst.msk [vmem:[#allocation2 + $0x2] sm:$0x1] %vm375_vm0, %v417_v11  ;;  %s1272_s13 = smov (!%p427_p8, %s737_s13), 0  ;;  %s431_s17 = scalar_lea.vmem %s1218_s1, %s1270_s14 }
  0x43   : > { %s441_s2 = sld [smem:[#allocation4 + %s1240_s24]]  ;;  %s1274_s13 = smov (!%p738_p9, %s1272_s13), 11  ;;  %v432_v12 = vld [vmem:[%s431_s17] sm:$0x1] }
  0x44   : > { %s435_s26 = scalar_select %p421_p5, 1, 0 }
  0x45   : > { %s433_s12 = scalar_lea.vmem %s1066_s22, %s1274_s13  ;;  %s461_s30 = sadd.s32 5, %s1051_s29 }
  0x46   : > { %v434_v13 = vld [vmem:[%s433_s12] sm:$0x1]  ;;  %v436_v14 = vstv %s435_s26  ;;  %s1115_s11 = sld [smem:[#allocation4 + %s461_s30]] }
  0x47   : > { %vm437_vm4 = vcmp.eq.s32.totalorder %v436_v14, 1  ;;  %s1118_s23 = sld [smem:[#allocation4 + %s482_s0]] }
  0x48   : > { %v438_v15 = vsel %vm437_vm4, %v434_v13, %v432_v12 }
  0x49   : > { %p442_p12 = scmp.ge.s32.totalorder %s441_s2, 16  ;;  %p443_p13 = scmp.gt.s32.totalorder %s441_s2, 0  ;;  %439 = vst.msk [vmem:[#allocation2 + $0x3] sm:$0x1] %vm375_vm0, %v438_v15 }
  0x4a   : > { %p743_p0 = scmp.lt.s32.totalorder %s441_s2, 15  ;;  %s748_s25 = sadd.s32 4294967280, %s441_s2 }
  0x4b   : > { %s1276_s2 = smov (!%p443_p13, %s441_s2), 0  ;;  %p448_p1 = scmp.gt.s32.totalorder %s748_s25, 0 }
  0x4c   : > { %p749_p2 = scmp.lt.s32.totalorder %s748_s25, 11  ;;  %s1278_s2 = smov (!%p743_p0, %s1276_s2), 15 }
  0x4d   : > { %s1280_s25 = smov (!%p448_p1, %s748_s25), 0  ;;  %s452_s14 = scalar_lea.vmem %s1218_s1, %s1278_s2 }
  0x4e   : > { %p463_p3 = scmp.ge.s32.totalorder %s1115_s11, 16  ;;  %s1282_s25 = smov (!%p749_p2, %s1280_s25), 11  ;;  %v453_v16 = vld [vmem:[%s452_s14] sm:$0x1] }
  0x4f   : > { %s456_s15 = scalar_select %p442_p12, 1, 0 }
  0x50   : > { %s454_s16 = scalar_lea.vmem %s1066_s22, %s1282_s25  ;;  %p464_p4 = scmp.gt.s32.totalorder %s1115_s11, 0 }
  0x51   : > { %v455_v17 = vld [vmem:[%s454_s16] sm:$0x1]  ;;  %v457_v18 = vstv %s456_s15  ;;  %p754_p5 = scmp.lt.s32.totalorder %s1115_s11, 15  ;;  %s759_s17 = sadd.s32 4294967280, %s1115_s11 }
  0x52   : > { %vm458_vm5 = vcmp.eq.s32.totalorder %v457_v18, 1  ;;  %s465_s24 = scalar_select %p464_p4, %s1115_s11, 0 }
  0x53   : > { %v459_v19 = vsel %vm458_vm5, %v455_v17, %v453_v16  ;;  %p469_p6 = scmp.gt.s32.totalorder %s759_s17, 0  ;;  %p760_p7 = scmp.lt.s32.totalorder %s759_s17, 11 }
  0x54   : > { %460 = vst.msk [vmem:[#allocation2 + $0x4] sm:$0x1] %vm375_vm0, %v459_v19  ;;  %s1284_s24 = smov (!%p754_p5, %s465_s24), 15  ;;  %p484_p8 = scmp.ge.s32.totalorder %s1118_s23, 16 }
  0x55   : > { %s1286_s17 = smov (!%p469_p6, %s759_s17), 0  ;;  %s473_s12 = scalar_lea.vmem %s1218_s1, %s1284_s24 }
  0x56   : > { %s1288_s17 = smov (!%p760_p7, %s1286_s17), 11  ;;  %v474_v20 = vld [vmem:[%s473_s12] sm:$0x1]  ;;  %p485_p9 = scmp.gt.s32.totalorder %s1118_s23, 0 }
  0x57   : > { %s477_s30 = scalar_select %p463_p3, 1, 0 }
  0x58   : > { %s475_s25 = scalar_lea.vmem %s1066_s22, %s1288_s17  ;;  %p765_p12 = scmp.lt.s32.totalorder %s1118_s23, 15 }
  0x59   : > { %v476_v21 = vld [vmem:[%s475_s25] sm:$0x1]  ;;  %v478_v22 = vstv %s477_s30  ;;  %s770_s0 = sadd.s32 4294967280, %s1118_s23  ;;  %s504_s16 = sld [smem:[#allocation4 + %s503_s28]] }
  0x5a   : > { %vm479_vm6 = vcmp.eq.s32.totalorder %v478_v22, 1  ;;  %s486_s13 = scalar_select %p485_p9, %s1118_s23, 0 }
  0x5b   : > { %v480_v23 = vsel %vm479_vm6, %v476_v21, %v474_v20  ;;  %p490_p13 = scmp.gt.s32.totalorder %s770_s0, 0  ;;  %p771_p0 = scmp.lt.s32.totalorder %s770_s0, 11 }
  0x5c   : > { %481 = vst.msk [vmem:[#allocation2 + $0x5] sm:$0x1] %vm375_vm0, %v480_v23  ;;  %s1290_s13 = smov (!%p765_p12, %s486_s13), 15  ;;  %s697_s25 = sshll.u32 %s1248_s21, 3 }
  0x5d   : > { %s1292_s0 = smov (!%p490_p13, %s770_s0), 0  ;;  %s494_s15 = scalar_lea.vmem %s1218_s1, %s1290_s13 }
  0x5e   : > { %s1294_s0 = smov (!%p771_p0, %s1292_s0), 11  ;;  %v495_v24 = vld [vmem:[%s494_s15] sm:$0x1]  ;;  %s354_s11 = scalar_lea.vmem %s1220_s3, %s697_s25 }
  0x5f   : > { %s498_s17 = scalar_select %p484_p8, 1, 0  ;;  %v525_v35 = vld [vmem:[%s354_s11] sm:$0xff] }
  0x60   : > { %s496_s24 = scalar_lea.vmem %s1066_s22, %s1294_s0  ;;  %p505_p1 = scmp.ge.s32.totalorder %s504_s16, 16  ;;  %531 = vperm.xlu1 %865, %v525_v35  }
  0x61   : > { %v497_v25 = vld [vmem:[%s496_s24] sm:$0x1]  ;;  %v499_v26 = vstv %s498_s17  ;;  %p506_p2 = scmp.gt.s32.totalorder %s504_s16, 0  ;;  %p776_p3 = scmp.lt.s32.totalorder %s504_s16, 15 }
  0x62   : > { %vm500_vm7 = vcmp.eq.s32.totalorder %v499_v26, 1  ;;  %s781_s2 = sadd.s32 4294967280, %s504_s16 }
  0x63   : > { %v501_v27 = vsel %vm500_vm7, %v497_v25, %v495_v24  ;;  %s1296_s16 = smov (!%p506_p2, %s504_s16), 0  ;;  %p511_p4 = scmp.gt.s32.totalorder %s781_s2, 0 }
  0x64   : > { %502 = vst.msk [vmem:[#allocation2 + $0x6] sm:$0x1] %vm375_vm0, %v501_v27  ;;  %p782_p5 = scmp.lt.s32.totalorder %s781_s2, 11  ;;  %s1298_s16 = smov (!%p776_p3, %s1296_s16), 15 }
  0x65   : > { %s1300_s2 = smov (!%p511_p4, %s781_s2), 0  ;;  %s515_s26 = scalar_lea.vmem %s1218_s1, %s1298_s16 }
  0x66   : > { %s1302_s2 = smov (!%p782_p5, %s1300_s2), 11  ;;  %v516_v28 = vld [vmem:[%s515_s26] sm:$0x1]  ;;  %s947_s16 = smov [#allocation5]  }
  0x67   : > { %s519_s12 = scalar_select %p505_p1, 1, 0 }
  0x68   : > { %s517_s30 = scalar_lea.vmem %s1066_s22, %s1302_s2  ;;  %s601_s22 = scalar_lea.hbm %s1227_s10, %s1051_s29 }
  0x69   : > { %v518_v29 = vld [vmem:[%s517_s30] sm:$0x1]  ;;  %v520_v30 = vstv %s519_s12  ;;  %s343_s30 = sand.u32 1, %s935_s19   ;;  %s885_s17 = sshll.u32 %s947_s16, 4  ;;  %s886_s17 = int_to_ptr.vmem [resolvable:$false] %s885_s17 }
  0x6a   : > { %vm521_vm8 = vcmp.eq.s32.totalorder %v520_v30, 1  ;;  %s694_s25 = sshll.u32 %s343_s30, 3  ;;  %s590_s14 = scalar_lea.sflag [#allocation6], %s343_s30 }
  0x6b   : > { %v522_v31 = vsel %vm521_vm8, %v518_v29, %v516_v28  ;;  %s345_s0 = scalar_lea.vmem [#allocation5], %s694_s25  ;;  %s887_s24 = scalar_lea.vmem %s886_s17, 256 }
  0x6c   : > { %523 = vst.msk [vmem:[#allocation2 + $0x7] sm:$0x1] %vm375_vm0, %v522_v31  ;;  %s603_s13 = sshll.u32 %s345_s0, 4  ;;  %s604_s13 = int_to_ptr.vmem [resolvable:$true] %s603_s13 }
  0x6d   : > { %s881_s15 = scalar_lea.vmem %s604_s13, 128  ;;  %p888_p9 = scmp.lt.s32.totalorder %s604_s13, %s886_s17 }
  0x6e   : > { %p882_p6 = scmp.ne.s32.totalorder %s604_s13, %s881_s15  ;;  %p889_p12 = scmp.lt.s32.totalorder %s887_s24, %s881_s15 }
  0x70   : > { %p883_p7 = pnand %p882_p6, %p1041_p10  ;;  %p890_p13 = por %p889_p12, %p888_p9 }
  0x72   : > { %p884_p8 = pneg %p883_p7 }
  0x73   : > { %v524_v32 = vld [vmem:[#allocation2] sm:$0xff] }
  0x74   : > { %v566_v33 = vsel %vm565_vm9, %v524_v32, 0.0  ;;  %p891_p0 = pnand %p890_p13, %p884_p8 }
  0x75   : > { %567 = vadd.xlane.f32.xlu0 %v566_v33 }
  0xdb   : > { %v532_v54 = vpop.permute.xlu1 %531 }
  0xdc   : > { %v540_v59 = vmul.f32 %v538_v52, %v532_v54  ;;  %v557_v63 = vmul.f32 %v555_v58, %v532_v54  ;;  %v585_v2 = vmul.f32 %v584_v60, %v532_v54 }
  0xde   : > { %v547_v62 = vadd.f32 %v545_v57, %v540_v59  ;;  %v564_v3 = vadd.f32 %v562_v61, %v557_v63  ;;  %v586_v6 = vadd.f32 %v585_v2, %v582_v55 }
  0xfe   : > { %v568_v36 = vpop.xlane.xlu0 %567 }
  0xff   : > { %v570_v37 = vmul.f32 0.03125, %v568_v36 }
 0x101   : > { %v571_v38 = vsub.f32 %v524_v32, %v570_v37 }
 0x103   : > { %v572_v39 = vmul.f32 %v571_v38, %v571_v38 }
 0x105   : > { %v573_v40 = vsel %vm565_vm9, %v572_v39, 0.0 }
 0x106   : > { %574 = vadd.xlane.f32.xlu0 %v573_v40 }
 0x18f   : > { %v575_v42 = vpop.xlane.xlu0 %574 }
 0x190   : > { %v576_v43 = vmul.f32 0.03125, %v575_v42 }
 0x192   : > { %v577_v47 = vadd.f32 1e-12, %v576_v43 }
 0x194   : > { %867 = vrsqrt.f32 %v577_v47 }
 0x1a1   : > { %v868_v0 = vpop.eup %867 }
 0x1a2   : > { %v579_v1 = vmul.f32 %v868_v0, %v571_v38 }
 0x1a4   : > { %v580_v4 = vmul.f32 %v579_v1, %v547_v62 }
 0x1a6   : > { %v581_v5 = vadd.f32 %v580_v4, %v564_v3 }
 0x1a8   : > { %v587_v7 = vadd.f32 %v586_v6, %v581_v5 }
 0x1aa   : > { %588 = vst.msk [vmem:[%s345_s0] sm:$0xff] %vm565_vm9, %v587_v7 }
 0x1ab   : > { %894 = shalt.err (!%p891_p0)
}
 0x1ac   : > { %s895_s2 = scalar_lea.hbm %s601_s22, 128  ;;  %s899_s28 = scalar_lea.hbm %s1227_s10, 256 }
 0x1ad   : > { %p896_p1 = scmp.ne.s32.totalorder %s601_s22, %s895_s2  ;;  %p900_p4 = scmp.lt.s32.totalorder %s601_s22, %s1227_s10 }
 0x1ae   : > { %p901_p5 = scmp.lt.s32.totalorder %s899_s28, %s895_s2 }
 0x1af   : > { %p897_p2 = pnand %p896_p1, %p1041_p10 }
 0x1b0   : > { %p902_p6 = por %p901_p5, %p900_p4 }
 0x1b1   : > { %p898_p3 = pneg %p897_p2 }
 0x1b3   : > { %p903_p7 = pnand %p902_p6, %p898_p3 }
 0x1b5   : > { %906 = shalt.err (!%p903_p7)
}
 0x1b6   : > { %824 = dma.vmem_to_hbm [thread:$0]  (%p1041_p10), %s604_s13, 128, %s601_s22, %s590_s14  }
 0x1b7 PF: > { %p830_p8 = scmp.ge.s32.totalorder %s943_s20, 2  ;;  %s615_s25 = sand.u32 1, %s931_s18  }
 0x1b8   : > { %s616_s0 = scalar_lea.sflag [#allocation6], %s615_s25 }
 0x1b9   : > { %p827_p9 = pnand %p830_p8, %p1045_p11 }
 0x1bb   : > { %p828_p12 = pneg %p827_p9 }
 0x1bd   : > { %926 = dma.done.wait (%p828_p12), %s616_s0, 128  }
 0x1be   : > { %928 = vsyncadd (%p828_p12), %s616_s0, 4294967168  ;;  %s1242_s20 = sld [smem:[#allocation10_spill]]  ;;  %s1245_s18 = smov %s935_s19 }
 0x1bf   : > { %s1243_s11 = sld [smem:[#allocation9_spill]] }
 0x1c0   : > { %s1244_s0 = sld [smem:[#allocation11_spill]] }
 0x1c4   : > { %p26_p13 = scmp.ge.s32.totalorder %s1242_s20, 4  }
 0x1c5   : > { %s1246_s19 = smov %s1243_s11 }
 0x1c6   :  { %28 = sbr.rel (!%p26_p13) target bundleno = 18 (0x12), region = 110 }
 0x1cb   :  { %621 = vsyncpa [#allocation6], 1 }
 0x1cc   :  { %623 = vsyncpa [#allocation6 + $0x1], 1 }

</bundles_post_ra>
